<compile_context>
chip_gen: v5e
topology: v5e:2x2
jax: 0.10.0
libtpu: 0.0.40
codegen_flags: <defaults>
</compile_context>

<pallas_src>
import jax
import jax.numpy as jnp
from jax import lax
from jax.experimental import pallas as pl
from jax.experimental.pallas import tpu as pltpu

LANE = 128
SUBLANE = 8
_SMALL_BATCH = 512


def _round_up(x, m):
    return ((x + m - 1) // m) * m


def _vmem_capacity_bytes():
    try:
        info = pltpu.get_tpu_info()
        for name in ("vmem_capacity_bytes", "vmem_size_bytes", "vmem_bytes"):
            val = getattr(info, name, None)
            if val:
                return int(val)
    except Exception:
        pass
    return 64 * 1024 * 1024  # conservative: v7x per-TensorCore VMEM


def _pick_block_b(batch, obs_size, act_size, io_itemsize):
    """VMEM-budget-driven batch tile (multiple of 128) + scoped VMEM limit."""
    vmem_phys = _vmem_capacity_bytes()
    vmem_limit = int(min(vmem_phys * 3 // 4, 96 * 1024 * 1024))
    budget = vmem_limit - 4 * 1024 * 1024  # weights / misc headroom

    # Conservative VMEM bytes per batch row: HBM-layout in/out blocks are
    # lane-padded to 128 and double-buffered; lane-dense intermediates are
    # sublane-padded to 8.
    hid = 8
    per_row = (
        2 * _round_up(obs_size, LANE) * io_itemsize      # x block (double buffered)
        + 2 * _round_up(act_size, LANE) * io_itemsize    # out block (double buffered)
        + _round_up(act_size, LANE) * 4                  # transposed-output temp
        + (3 * _round_up(hid, SUBLANE) + _round_up(act_size, SUBLANE)) * 4
    )
    block_b = budget // per_row
    block_b = max(LANE, (block_b // LANE) * LANE)
    block_b = min(block_b, 32768)                        # hard cap
    block_b = min(block_b, _round_up(batch, LANE))
    # Give both v7x TensorCores work for large batches.
    if batch >= 2048 and pl.cdiv(batch, block_b) < 2:
        block_b = _round_up(pl.cdiv(batch, 2), LANE)
    return block_b, vmem_limit


def _actor_kernel(x_ref, w1_ref, b1_ref, w2_ref, b2_ref, w3_ref, b3_ref, o_ref):
    x = x_ref[...]                                       # [block_b, obs]
    if x.dtype != jnp.float32:
        x = x.astype(jnp.float32)

    # Layer 1: contract over obs -- MXU consumes the batch operand transposed,
    # so no [block_b, obs] -> [obs, block_b] copy is materialized.
    h = lax.dot_general(w1_ref[...], x, (((1,), (1,)), ((), ())),
                        preferred_element_type=jnp.float32)            # [hid, bb]
    h = jnp.maximum(h + b1_ref[...], 0.0)

    h = jnp.dot(w2_ref[...], h, preferred_element_type=jnp.float32)    # [hid, bb]
    h = jnp.maximum(h + b2_ref[...], 0.0)

    y = jnp.dot(w3_ref[...], h, preferred_element_type=jnp.float32)    # [act, bb]
    y = jnp.tanh(y + b3_ref[...])

    # Single small XLU transpose to the [block_b, act] store layout dictated
    # by the [B, act] HBM output.  Rows past B (ragged block) hold garbage but
    # are masked on writeback; batch rows never mix.
    o_ref[...] = jnp.transpose(y).astype(o_ref.dtype)


def _reference_forward(x, params):
    w1, b1, w2, b2, w3, b3 = params
    h1 = jnp.maximum(x @ w1.T + b1.T, 0.0)
    h2 = jnp.maximum(h1 @ w2.T + b2.T, 0.0)
    return jnp.tanh(h2 @ w3.T + b3.T)


def ddpg_actor_forward(x, params, *, max_block_b=None, force_pallas=False):
    """x: [B, obs_size]. params: PyTorch-native (w [out,in], b [out,1]) tuple.

    Returns [B, act_size].
    """
    w1, b1, w2, b2, w3, b3 = params
    B, obs_size = x.shape
    hidden = w1.shape[0]
    act_size = w3.shape[0]

    if not force_pallas and B < _SMALL_BATCH:
        # Fused XLA MLP beats pallas launch + tile overhead at tiny batches.
        return _reference_forward(x, params)

    # Keep in-kernel tiles 128-lane aligned; only ever pads when B < 128.
    pad_rows = LANE - B if B < LANE else 0
    xp = jnp.pad(x, ((0, pad_rows), (0, 0))) if pad_rows else x
    Bp = B + pad_rows

    block_b, vmem_limit = _pick_block_b(Bp, obs_size, act_size, x.dtype.itemsize)
    if max_block_b is not None:
        block_b = min(block_b, max(LANE, (max_block_b // LANE) * LANE))
    num_tiles = pl.cdiv(Bp, block_b)

    cost = pl.CostEstimate(
        flops=2 * B * (obs_size * hidden + hidden * hidden + hidden * act_size),
        transcendentals=B * act_size,
        bytes_accessed=(
            x.dtype.itemsize * B * (obs_size + act_size)
            + 4 * (hidden * obs_size + hidden * hidden + act_size * hidden
                   + 2 * hidden + act_size)
        ),
    )

    def const_spec(shape):
        return pl.BlockSpec(shape, lambda i: (0,) * len(shape))

    out = pl.pallas_call(
        _actor_kernel,
        out_shape=jax.ShapeDtypeStruct((Bp, act_size), x.dtype),
        grid=(num_tiles,),
        in_specs=[
            pl.BlockSpec((block_b, obs_size), lambda i: (i, 0)),   # x tile
            const_spec(w1.shape), const_spec(b1.shape),
            const_spec(w2.shape), const_spec(b2.shape),
            const_spec(w3.shape), const_spec(b3.shape),
        ],
        out_specs=pl.BlockSpec((block_b, act_size), lambda i: (i, 0)),
        compiler_params=pltpu.CompilerParams(
            dimension_semantics=("parallel",),
            vmem_limit_bytes=vmem_limit,
        ),
        cost_estimate=cost,
    )(xp, w1, b1, w2, b2, w3, b3)

    return out[:B] if pad_rows else out


def init_params(key, obs_size, act_size, hidden=4, dtype=jnp.float32):
    """Deterministic synthetic init; PyTorch-native shapes ([out,in] / [out,1])."""
    ks = jax.random.split(key, 6)

    def lin(kw, kb, fan_in, fan_out):
        bound = 1.0 / jnp.sqrt(fan_in)
        w = jax.random.uniform(kw, (fan_out, fan_in), dtype, -bound, bound)
        b = jax.random.uniform(kb, (fan_out, 1), dtype, -bound, bound)
        return w, b

    w1, b1 = lin(ks[0], ks[1], obs_size, hidden)
    w2, b2 = lin(ks[2], ks[3], hidden, hidden)
    w3, b3 = lin(ks[4], ks[5], hidden, act_size)
    return (w1, b1, w2, b2, w3, b3)


if __name__ == "__main__":
    key = jax.random.PRNGKey(0)
    k1, k2, k3 = jax.random.split(key, 3)

    obs_size, act_size = 32, 8
    params = init_params(k3, obs_size, act_size)

    # Case 1: tiny batch, single block (pads to one 128-row aligned tile).
    x_small = jax.random.normal(k1, (16, obs_size), dtype=jnp.float32)
    out_small = jax.block_until_ready(
        ddpg_actor_forward(x_small, params, force_pallas=True))
    ref_small = _reference_forward(x_small, params)
    assert out_small.shape == (16, act_size)
    assert jnp.allclose(out_small, ref_small, atol=1e-5, rtol=1e-5)

    # Case 2: multi-tile grid with a ragged last block (no padding / slicing).
    x_big = jax.random.normal(k2, (200, obs_size), dtype=jnp.float32)
    out_big = jax.block_until_ready(
        ddpg_actor_forward(x_big, params, force_pallas=True, max_block_b=128))
    ref_big = _reference_forward(x_big, params)
    assert out_big.shape == (200, act_size)
    assert jnp.allclose(out_big, ref_big, atol=1e-5, rtol=1e-5)

    # Small-batch auto path (fused XLA fallback) stays consistent.
    out_auto = jax.block_until_ready(ddpg_actor_forward(x_small, params))
    assert jnp.allclose(out_auto, ref_small, atol=1e-5, rtol=1e-5)

    print("KERNEL_OK")
</pallas_src>

<mosaic_0001>
module attributes {stable_mosaic.version = 11 : i64} {
  func.func @_actor_kernel(%arg0: i32, %arg1: memref<128x32xf32, #tpu.memory_space<vmem>>, %arg2: memref<4x32xf32, #tpu.memory_space<vmem>>, %arg3: memref<4x1xf32, #tpu.memory_space<vmem>>, %arg4: memref<4x4xf32, #tpu.memory_space<vmem>>, %arg5: memref<4x1xf32, #tpu.memory_space<vmem>>, %arg6: memref<8x4xf32, #tpu.memory_space<vmem>>, %arg7: memref<8x1xf32, #tpu.memory_space<vmem>>, %arg8: memref<128x8xf32, #tpu.memory_space<vmem>>) attributes {dimension_semantics = [#tpu.dimension_semantics<parallel>], iteration_bounds = array<i64: 1>, scalar_prefetch = 0 : i64, scratch_operands = 0 : i64, tpu.core_type = #tpu.core_type<tc>, window_params = [{transform_indices = @transform_0, window_bounds = array<i64: 128, 32>}, {pipeline_mode = #tpu.pipeline_mode<synchronous>, transform_indices = @transform_1, window_bounds = array<i64: 4, 32>}, {pipeline_mode = #tpu.pipeline_mode<synchronous>, transform_indices = @transform_2, window_bounds = array<i64: 4, 1>}, {pipeline_mode = #tpu.pipeline_mode<synchronous>, transform_indices = @transform_3, window_bounds = array<i64: 4, 4>}, {pipeline_mode = #tpu.pipeline_mode<synchronous>, transform_indices = @transform_4, window_bounds = array<i64: 4, 1>}, {pipeline_mode = #tpu.pipeline_mode<synchronous>, transform_indices = @transform_5, window_bounds = array<i64: 8, 4>}, {pipeline_mode = #tpu.pipeline_mode<synchronous>, transform_indices = @transform_6, window_bounds = array<i64: 8, 1>}, {transform_indices = @transform_7, window_bounds = array<i64: 128, 8>}]} {
    %c0 = arith.constant 0 : index
    %c0_0 = arith.constant 0 : index
    %0 = vector.load %arg1[%c0, %c0_0] : memref<128x32xf32, #tpu.memory_space<vmem>>, vector<128x32xf32>
    %c0_1 = arith.constant 0 : index
    %c0_2 = arith.constant 0 : index
    %1 = vector.load %arg2[%c0_1, %c0_2] : memref<4x32xf32, #tpu.memory_space<vmem>>, vector<4x32xf32>
    %cst = arith.constant dense<0.000000e+00> : vector<4x128xf32>
    %2 = tpu.matmul %1, %0, %cst {dimension_numbers = #tpu.dot_dimension_numbers<[1], [1], [0], [0], [0, 0, 1, 0], [], []>} : vector<4x32xf32>, vector<128x32xf32>, vector<4x128xf32> -> vector<4x128xf32>
    %c0_3 = arith.constant 0 : index
    %c0_4 = arith.constant 0 : index
    %3 = vector.load %arg3[%c0_3, %c0_4] : memref<4x1xf32, #tpu.memory_space<vmem>>, vector<4x1xf32>
    %4 = vector.broadcast %3 : vector<4x1xf32> to vector<4x128xf32>
    %5 = arith.addf %2, %4 : vector<4x128xf32>
    %cst_5 = arith.constant 0.000000e+00 : f32
    %6 = vector.broadcast %cst_5 : f32 to vector<4x128xf32>
    %7 = arith.maximumf %5, %6 : vector<4x128xf32>
    %c0_6 = arith.constant 0 : index
    %c0_7 = arith.constant 0 : index
    %8 = vector.load %arg4[%c0_6, %c0_7] : memref<4x4xf32, #tpu.memory_space<vmem>>, vector<4x4xf32>
    %cst_8 = arith.constant dense<0.000000e+00> : vector<4x128xf32>
    %9 = tpu.matmul %8, %7, %cst_8 {dimension_numbers = #tpu.dot_dimension_numbers<[1], [0], [0], [1], [0, 0, 1, 1], [], []>} : vector<4x4xf32>, vector<4x128xf32>, vector<4x128xf32> -> vector<4x128xf32>
    %c0_9 = arith.constant 0 : index
    %c0_10 = arith.constant 0 : index
    %10 = vector.load %arg5[%c0_9, %c0_10] : memref<4x1xf32, #tpu.memory_space<vmem>>, vector<4x1xf32>
    %11 = vector.broadcast %10 : vector<4x1xf32> to vector<4x128xf32>
    %12 = arith.addf %9, %11 : vector<4x128xf32>
    %cst_11 = arith.constant 0.000000e+00 : f32
    %13 = vector.broadcast %cst_11 : f32 to vector<4x128xf32>
    %14 = arith.maximumf %12, %13 : vector<4x128xf32>
    %c0_12 = arith.constant 0 : index
    %c0_13 = arith.constant 0 : index
    %15 = vector.load %arg6[%c0_12, %c0_13] : memref<8x4xf32, #tpu.memory_space<vmem>>, vector<8x4xf32>
    %cst_14 = arith.constant dense<0.000000e+00> : vector<8x128xf32>
    %16 = tpu.matmul %15, %14, %cst_14 {dimension_numbers = #tpu.dot_dimension_numbers<[1], [0], [0], [1], [0, 0, 1, 1], [], []>} : vector<8x4xf32>, vector<4x128xf32>, vector<8x128xf32> -> vector<8x128xf32>
    %c0_15 = arith.constant 0 : index
    %c0_16 = arith.constant 0 : index
    %17 = vector.load %arg7[%c0_15, %c0_16] : memref<8x1xf32, #tpu.memory_space<vmem>>, vector<8x1xf32>
    %18 = vector.broadcast %17 : vector<8x1xf32> to vector<8x128xf32>
    %19 = arith.addf %16, %18 : vector<8x128xf32>
    %20 = math.tanh %19 : vector<8x128xf32>
    %21 = tpu.transpose %20, [1, 0] : vector<8x128xf32> -> vector<128x8xf32>
    %c0_17 = arith.constant 0 : index
    %c0_18 = arith.constant 0 : index
    %22 = vector.load %arg8[%c0_17, %c0_18] : memref<128x8xf32, #tpu.memory_space<vmem>>, vector<128x8xf32>
    tpu.vector_store %arg8[%c0_17, %c0_18], %21 {strides = array<i32>} : memref<128x8xf32, #tpu.memory_space<vmem>>, vector<128x8xf32>,
    return
  }
  func.func @transform_0(%arg0: i32) -> (i32, i32) {
    %c0_i32 = arith.constant 0 : i32
    %c0_i32_0 = arith.constant 0 : i32
    return %arg0, %c0_i32 : i32, i32
  }
  func.func @transform_1(%arg0: i32) -> (i32, i32) {
    %c0_i32 = arith.constant 0 : i32
    %c0_i32_0 = arith.constant 0 : i32
    %c0_i32_1 = arith.constant 0 : i32
    return %c0_i32, %c0_i32_0 : i32, i32
  }
  func.func @transform_2(%arg0: i32) -> (i32, i32) {
    %c0_i32 = arith.constant 0 : i32
    %c0_i32_0 = arith.constant 0 : i32
    %c0_i32_1 = arith.constant 0 : i32
    return %c0_i32, %c0_i32_0 : i32, i32
  }
  func.func @transform_3(%arg0: i32) -> (i32, i32) {
    %c0_i32 = arith.constant 0 : i32
    %c0_i32_0 = arith.constant 0 : i32
    %c0_i32_1 = arith.constant 0 : i32
    return %c0_i32, %c0_i32_0 : i32, i32
  }
  func.func @transform_4(%arg0: i32) -> (i32, i32) {
    %c0_i32 = arith.constant 0 : i32
    %c0_i32_0 = arith.constant 0 : i32
    %c0_i32_1 = arith.constant 0 : i32
    return %c0_i32, %c0_i32_0 : i32, i32
  }
  func.func @transform_5(%arg0: i32) -> (i32, i32) {
    %c0_i32 = arith.constant 0 : i32
    %c0_i32_0 = arith.constant 0 : i32
    %c0_i32_1 = arith.constant 0 : i32
    return %c0_i32, %c0_i32_0 : i32, i32
  }
  func.func @transform_6(%arg0: i32) -> (i32, i32) {
    %c0_i32 = arith.constant 0 : i32
    %c0_i32_0 = arith.constant 0 : i32
    %c0_i32_1 = arith.constant 0 : i32
    return %c0_i32, %c0_i32_0 : i32, i32
  }
  func.func @transform_7(%arg0: i32) -> (i32, i32) {
    %c0_i32 = arith.constant 0 : i32
    %c0_i32_0 = arith.constant 0 : i32
    return %arg0, %c0_i32 : i32, i32
  }
}

</mosaic_0001>

<bundles_post_ra>
// kernel: tpu_custom_call.1
= control target key start
LH: loop header
LB: loop body
LE: loop exit
PB: predicated region body
PF: predicated region fallthrough
CT: control target
= control target key end

     0   :  { %vm49_vm0 = vcmask 261120   ;;  %v272_v10 = vmov 0   ;;  %vm133_vm1 = vcmask 1043456   ;;  %vm129_vm2 = vcmask 31744   ;;  %s460_s0 = inlined_call_operand.vmem [shape: f32[128,32], index: 0, kind: input, shape index: {}]   ;;  %s461_s2 = inlined_call_operand.vmem [shape: f32[4,1], index: 2, kind: input, shape index: {}]   ;;  %s462_s4 = inlined_call_operand.vmem [shape: f32[4,1], index: 4, kind: input, shape index: {}]   ;;  %s463_s1 = inlined_call_operand.vmem [shape: f32[4,32], index: 1, kind: input, shape index: {}]   ;;  %s464_s3 = inlined_call_operand.vmem [shape: f32[4,4], index: 3, kind: input, shape index: {}]   ;;  %s465_s6 = inlined_call_operand.vmem [shape: f32[8,1], index: 6, kind: input, shape index: {}]   ;;  %s466_s5 = inlined_call_operand.vmem [shape: f32[8,4], index: 5, kind: input, shape index: {}]   ;;  %s467_s7 = inlined_call_operand.vmem [shape: f32[128,8], index: 7, kind: output, shape index: {}]  }
   0x1   :  { %v41_v0 = vld [vmem:[%s460_s0 + $0x78] sm:$0xff]  ;;  %v40_v1 = vld [vmem:[%s460_s0 + $0x70] sm:$0xff]  ;;  %v39_v2 = vld [vmem:[%s460_s0 + $0x68] sm:$0xff]  ;;  %268 = vset.pattern.permute.xlu0 %v272_v10  ;;  %269 = vset.pattern.permute.xlu1 %v272_v10  ;;  %vm224_vm3 = vcmask 64512  }
   0x2   :  { %245 = vmatpush.xpose.msk.msra.mxu0 %vm49_vm0, %v41_v0  ;;  %v38_v3 = vld [vmem:[%s460_s0 + $0x60] sm:$0xff]  ;;  %v37_v4 = vld [vmem:[%s460_s0 + $0x58] sm:$0xff]  ;;  %v36_v5 = vld [vmem:[%s460_s0 + $0x50] sm:$0xff] }
   0x3   :  { %v35_v6 = vld [vmem:[%s460_s0 + $0x48] sm:$0xff]  ;;  %v34_v7 = vld [vmem:[%s460_s0 + $0x40] sm:$0xff]  ;;  %v33_v8 = vld [vmem:[%s460_s0 + $0x38] sm:$0xff] }
   0x4   :  { %v43_v9 = vld [vmem:[%s461_s2] sm:$0xf]  ;;  %v32_v11 = vld [vmem:[%s460_s0 + $0x30] sm:$0xff]  ;;  %v31_v12 = vld [vmem:[%s460_s0 + $0x28] sm:$0xff] }
   0x5   :  { %46 = vperm.xlu0 %268, %v43_v9   ;;  %v123_v13 = vld [vmem:[%s462_s4] sm:$0xf]  ;;  %v29_v15 = vld [vmem:[%s460_s0 + $0x18] sm:$0xff]  ;;  %v28_v16 = vld [vmem:[%s460_s0 + $0x10] sm:$0xff] }
   0x6   :  { %246 = vmatpush.xpose.msk.msra.mxu0 %vm49_vm0, %v40_v1  ;;  %v30_v14 = vld [vmem:[%s460_s0 + $0x20] sm:$0xff]  ;;  %v27_v17 = vld [vmem:[%s460_s0 + $0x8] sm:$0xff] }
   0x7   :  { %v26_v18 = vld [vmem:[%s460_s0] sm:$0xff] }
   0x8   :  { %v42_v19 = vld [vmem:[%s463_s1] sm:$0xf] }
   0x9   :  { %v122_v24 = vld [vmem:[%s464_s3] sm:$0xf] }
   0xa   :  { %247 = vmatpush.xpose.msk.msra.mxu0 %vm49_vm0, %v39_v2  ;;  %v159_v25 = vld [vmem:[%s465_s6] sm:$0xff] }
   0xb   :  { %162 = vperm.xlu1 %269, %v159_v25   ;;  %v158_v30 = vld [vmem:[%s466_s5] sm:$0xff] }
   0xd   :  { %126 = vperm.xlu0 %268, %v123_v13  }
   0xe   :  { %248 = vmatpush.xpose.msk.msra.mxu0 %vm49_vm0, %v38_v3 }
  0x12   :  { %249 = vmatpush.xpose.msk.msra.mxu0 %vm49_vm0, %v37_v4 }
  0x16   :  { %250 = vmatpush.xpose.msk.msra.mxu0 %vm49_vm0, %v36_v5 }
  0x1a   :  { %251 = vmatpush.xpose.msk.msra.mxu0 %vm49_vm0, %v35_v6 }
  0x1e   :  { %252 = vmatpush.xpose.msk.msra.mxu0 %vm49_vm0, %v34_v7 }
  0x22   :  { %253 = vmatpush.xpose.msk.msra.mxu0 %vm49_vm0, %v33_v8 }
  0x26   :  { %254 = vmatpush.xpose.msk.msra.mxu0 %vm49_vm0, %v32_v11 }
  0x2a   :  { %255 = vmatpush.xpose.msk.msra.mxu0 %vm49_vm0, %v31_v12 }
  0x2e   :  { %256 = vmatpush.xpose.msk.msra.mxu0 %vm49_vm0, %v30_v14 }
  0x32   :  { %257 = vmatpush.xpose.msk.msra.mxu0 %vm49_vm0, %v29_v15 }
  0x36   :  { %258 = vmatpush.xpose.msk.msra.mxu0 %vm49_vm0, %v28_v16 }
  0x3a   :  { %259 = vmatpush.xpose.msk.msra.mxu0 %vm49_vm0, %v27_v17 }
  0x3e   :  { %260 = vmatpush.xpose.msk.msra.mxu0 %vm49_vm0, %v26_v18 }
  0x41   :  { %261 = vmatmul.msk.f32.vlgmr.msra.gmra.mxu0 %vm49_vm0, %v42_v19 }
  0x77   :  { %v47_v20 = vpop.permute.xlu0 %46 }
  0x7d   :  { %v163_v31 = vpop.permute.xlu1 %162 }
  0x7f   :  { %v127_v26 = vpop.permute.xlu0 %126 }
  0xbe   :  { %v118_v21 = vpop.f32.mrf.mxu0 }
  0xbf   :  { %v119_v22 = vadd.f32 %v118_v21, %v47_v20 }
  0xc1   :  { %v121_v23 = vmax.f32 %v119_v22, 0.0 }
  0xc3   :  { %262 = vmatpush.msk.msra.mxu1 %vm133_vm1, %v121_v23 }
  0xc4   :  { %263 = vmatmul.msk.f32.vlgmr.msra.gmra.mxu1 %vm129_vm2, %v122_v24 }
 0x141   :  { %v154_v27 = vpop.f32.mrf.mxu1 }
 0x142   :  { %v155_v28 = vadd.f32 %v154_v27, %v127_v26 }
 0x144   :  { %v157_v29 = vmax.f32 %v155_v28, 0.0 }
 0x146   :  { %264 = vmatpush.msk.msra.mxu2 %vm133_vm1, %v157_v29 }
 0x147   :  { %265 = vmatmul.msk.f32.vlgmr.msra.gmra.mxu2 %vm129_vm2, %v158_v30 }
 0x1ca   :  { %v188_v32 = vpop.f32.mrf.mxu2 }
 0x1cb   :  { %v189_v33 = vadd.f32 %v188_v32, %v163_v31 }
 0x1cd   :  { %270 = vtanh.f32 %v189_v33 }
 0x1d3   :  { %v271_v34 = vpop.eup %270 }
 0x1d4   :  { %192 = vxpose.xlu1.b32.start.end [1/1] (short) %v271_v34, 128 }
 0x278   :  { %v208_v35 = vpop.trf.xlu1 }
 0x279   :  { %225 = vst.msk [vmem:[%s467_s7] sm:$0xff] %vm224_vm3, %v208_v35 }
 0x280   :  { %v209_v36 = vpop.trf.xlu1 }
 0x281   :  { %226 = vst.msk [vmem:[%s467_s7 + $0x8] sm:$0xff] %vm224_vm3, %v209_v36 }
 0x288   :  { %v210_v37 = vpop.trf.xlu1 }
 0x289   :  { %227 = vst.msk [vmem:[%s467_s7 + $0x10] sm:$0xff] %vm224_vm3, %v210_v37 }
 0x290   :  { %v211_v38 = vpop.trf.xlu1 }
 0x291   :  { %228 = vst.msk [vmem:[%s467_s7 + $0x18] sm:$0xff] %vm224_vm3, %v211_v38 }
 0x298   :  { %v212_v39 = vpop.trf.xlu1 }
 0x299   :  { %229 = vst.msk [vmem:[%s467_s7 + $0x20] sm:$0xff] %vm224_vm3, %v212_v39 }
 0x2a0   :  { %v213_v40 = vpop.trf.xlu1 }
 0x2a1   :  { %230 = vst.msk [vmem:[%s467_s7 + $0x28] sm:$0xff] %vm224_vm3, %v213_v40 }
 0x2a8   :  { %v214_v41 = vpop.trf.xlu1 }
 0x2a9   :  { %231 = vst.msk [vmem:[%s467_s7 + $0x30] sm:$0xff] %vm224_vm3, %v214_v41 }
 0x2b0   :  { %v215_v42 = vpop.trf.xlu1 }
 0x2b1   :  { %232 = vst.msk [vmem:[%s467_s7 + $0x38] sm:$0xff] %vm224_vm3, %v215_v42 }
 0x2b8   :  { %v216_v43 = vpop.trf.xlu1 }
 0x2b9   :  { %233 = vst.msk [vmem:[%s467_s7 + $0x40] sm:$0xff] %vm224_vm3, %v216_v43 }
 0x2c0   :  { %v217_v44 = vpop.trf.xlu1 }
 0x2c1   :  { %234 = vst.msk [vmem:[%s467_s7 + $0x48] sm:$0xff] %vm224_vm3, %v217_v44 }
 0x2c8   :  { %v218_v45 = vpop.trf.xlu1 }
 0x2c9   :  { %235 = vst.msk [vmem:[%s467_s7 + $0x50] sm:$0xff] %vm224_vm3, %v218_v45 }
 0x2d0   :  { %v219_v46 = vpop.trf.xlu1 }
 0x2d1   :  { %236 = vst.msk [vmem:[%s467_s7 + $0x58] sm:$0xff] %vm224_vm3, %v219_v46 }
 0x2d8   :  { %v220_v47 = vpop.trf.xlu1 }
 0x2d9   :  { %237 = vst.msk [vmem:[%s467_s7 + $0x60] sm:$0xff] %vm224_vm3, %v220_v47 }
 0x2e0   :  { %v221_v48 = vpop.trf.xlu1 }
 0x2e1   :  { %238 = vst.msk [vmem:[%s467_s7 + $0x68] sm:$0xff] %vm224_vm3, %v221_v48 }
 0x2e8   :  { %v222_v49 = vpop.trf.xlu1 }
 0x2e9   :  { %239 = vst.msk [vmem:[%s467_s7 + $0x70] sm:$0xff] %vm224_vm3, %v222_v49 }
 0x2f0   :  { %v223_v50 = vpop.trf.xlu1 }
 0x2f1   :  { %240 = vst.msk [vmem:[%s467_s7 + $0x78] sm:$0xff] %vm224_vm3, %v223_v50 }

</bundles_post_ra>
